<compile_context>
chip_gen: v5e
topology: v5e:2x2
jax: 0.10.0
libtpu: 0.0.40
codegen_flags: <defaults>
</compile_context>

<pallas_src>
import functools

import jax
import jax.numpy as jnp
from jax import lax
from jax.experimental import pallas as pl
from jax.experimental.pallas import tpu as pltpu


def _lstm_disc_kernel(x_ref, wih_ref, whh_ref, b_ref, wlin_ref, blin_ref,
                      out_ref, *, T, B):
    """x_ref: (T*B, V) time-major flattened input (matmul dtype).
       wih_ref: (V, 4H), whh_ref: (H, 4H), wlin_ref: (H, C) (matmul dtype).
       b_ref: (1, 4H) f32, blin_ref: (1, C) f32.  out_ref: (B, C) f32."""
    H = whh_ref.shape[0]
    G = 4 * H

    # Hoisted input projection: one MXU call covering all time steps.
    gx = (jnp.dot(x_ref[...], wih_ref[...],
                  preferred_element_type=jnp.float32)
          + b_ref[...])                                   # (T*B, 4H) f32

    # Loop-invariant values (hoisted out of the recurrence).
    whh = whh_ref[...]                                    # (H, 4H)
    mm_dtype = whh.dtype
    lane = lax.broadcasted_iota(jnp.int32, (B, G), 1)
    g_mask = (lane >= 2 * H) & (lane < 3 * H)             # cell-gate (tanh) seg

    h = jnp.zeros((B, H), jnp.float32)
    c = jnp.zeros((B, H), jnp.float32)

    # Recurrence: fully unrolled (T static & small); h/c stay in vregs.
    # TODO(synk): for T >= ~64 switch to a lax.fori_loop carry to bound vreg
    # pressure; holding w_hh staged via pltpu.matmul_push_rhs/acc_lhs/pop
    # would drop 7 redundant RHS pushes but jnp.dot is kept for robustness.
    for t in range(T):
        gates = gx[t * B:(t + 1) * B, :] + jnp.dot(
            h.astype(mm_dtype), whh, preferred_element_type=jnp.float32)
        # Single-tanh gate nonlinearity: sigmoid(x) = 0.5*(1 + tanh(x/2)),
        # so one EUP push covers all four gates on the serial critical path.
        y = jnp.where(g_mask, gates, 0.5 * gates)
        th = jnp.tanh(y)
        acts = jnp.where(g_mask, th, 0.5 * th + 0.5)
        i_g = acts[:, 0 * H:1 * H]
        f_g = acts[:, 1 * H:2 * H]
        g_g = acts[:, 2 * H:3 * H]
        o_g = acts[:, 3 * H:4 * H]
        c = f_g * c + i_g * g_g          # elementwise state stays f32
        h = o_g * jnp.tanh(c)

    # Classifier head on the last hidden state + numerically-stable log-softmax.
    logits = (jnp.dot(h.astype(mm_dtype), wlin_ref[...],
                      preferred_element_type=jnp.float32)
              + blin_ref[...])                            # (B, C)
    m = jnp.max(logits, axis=-1, keepdims=True)
    s = logits - m
    lse = jnp.log(jnp.sum(jnp.exp(s), axis=-1, keepdims=True))
    out_ref[...] = s - lse


def prepare_params(w_ih, w_hh, b_ih, b_hh, w_lin, b_lin,
                   matmul_dtype=jnp.float32):
    """One-time weight layout prep — call at parameter load, NOT per forward.

    PyTorch layouts in:  w_ih (4H, V), w_hh (4H, H), b_ih/b_hh (4H,),
                         w_lin (C, H), b_lin (C,).
    matmul_dtype=jnp.bfloat16 is the right choice on v6e/v7x MXUs (elementwise
    state stays f32 in-kernel); keep f32 to match an f32 reference exactly.
    """
    four_h = w_ih.shape[0]
    num_classes = w_lin.shape[0]
    wih_t = jnp.transpose(w_ih).astype(matmul_dtype)                 # (V, 4H)
    whh_t = jnp.transpose(w_hh).astype(matmul_dtype)                 # (H, 4H)
    bias = (b_ih + b_hh).astype(jnp.float32).reshape(1, four_h)      # (1, 4H)
    wlin_t = jnp.transpose(w_lin).astype(matmul_dtype)               # (H, C)
    blin = b_lin.astype(jnp.float32).reshape(1, num_classes)         # (1, C)
    return wih_t, whh_t, bias, wlin_t, blin


@jax.jit
def lstm_discriminator(x, params):
    """x: (B, T, V) float32.  params: output of prepare_params().  -> (B, C)."""
    wih_t, whh_t, bias, wlin_t, blin = params
    B, T, V = x.shape
    C = wlin_t.shape[1]

    # Time-major flatten so each per-step gate slab is a contiguous sublane
    # block inside the kernel (tiny one-off op, fused into this jit).
    x2d = jnp.transpose(x, (1, 0, 2)).reshape(T * B, V).astype(wih_t.dtype)

    vmem = lambda: pl.BlockSpec(memory_space=pltpu.MemorySpace.VMEM)

    # Single invocation, all operands VMEM-resident, no grid — the recurrence
    # is latency-bound and the state is a single vreg at these shapes.
    # TODO(synk): at production sizes (V >= 32k, large B) add a V-reduction
    # grid axis ("arbitrary") for the input projection plus a "parallel"
    # batch axis and vmem_limit_bytes headroom for v7x's 64 MiB VMEM.
    return pl.pallas_call(
        functools.partial(_lstm_disc_kernel, T=T, B=B),
        out_shape=jax.ShapeDtypeStruct((B, C), jnp.float32),
        in_specs=[vmem() for _ in range(6)],
        out_specs=vmem(),
    )(x2d, wih_t, whh_t, bias, wlin_t, blin)


def _reference(x, w_ih, w_hh, b_ih, b_hh, w_lin, b_lin):
    """Pure-JAX reference matching PyTorch LSTM + Linear + LogSoftmax."""
    B, T, V = x.shape
    H = w_hh.shape[1]

    def step(carry, x_t):
        h, c = carry
        gates = x_t @ w_ih.T + h @ w_hh.T + b_ih + b_hh
        i, f, g, o = jnp.split(gates, 4, axis=-1)
        i, f, g, o = (jax.nn.sigmoid(i), jax.nn.sigmoid(f),
                      jnp.tanh(g), jax.nn.sigmoid(o))
        c = f * c + i * g
        h = o * jnp.tanh(c)
        return (h, c), None

    init = (jnp.zeros((B, H), jnp.float32), jnp.zeros((B, H), jnp.float32))
    (h, _), _ = jax.lax.scan(step, init, jnp.transpose(x, (1, 0, 2)))
    logits = h @ w_lin.T + b_lin
    return jax.nn.log_softmax(logits, axis=-1)


if __name__ == "__main__":
    # Small shapes implied by the module: batch=2, seq=8, vocab=16,
    # hidden_dim=32, num_classes=4.
    B, T, V, H, C = 2, 8, 16, 32, 4
    std = 0.02  # init_parameters(): normal_(0, 0.02)

    key = jax.random.PRNGKey(0)
    ks = jax.random.split(key, 7)
    w_ih = std * jax.random.normal(ks[0], (4 * H, V), jnp.float32)
    w_hh = std * jax.random.normal(ks[1], (4 * H, H), jnp.float32)
    b_ih = std * jax.random.normal(ks[2], (4 * H,), jnp.float32)
    b_hh = std * jax.random.normal(ks[3], (4 * H,), jnp.float32)
    w_lin = std * jax.random.normal(ks[4], (C, H), jnp.float32)
    b_lin = std * jax.random.normal(ks[5], (C,), jnp.float32)
    x = jax.random.normal(ks[6], (B, T, V), jnp.float32)

    # One-time weight prep (f32 here to stay tight against the f32 reference;
    # pass matmul_dtype=jnp.bfloat16 for v6e/v7x production use).
    params = jax.block_until_ready(
        prepare_params(w_ih, w_hh, b_ih, b_hh, w_lin, b_lin))

    out = lstm_discriminator(x, params)
    out = jax.block_until_ready(out)

    ref = _reference(x, w_ih, w_hh, b_ih, b_hh, w_lin, b_lin)
    assert out.shape == (B, C)
    # Tolerance mildly relaxed: sigmoid is computed as 0.5*(1+tanh(x/2)) in
    # the kernel (exact identity; differs from the exp-based ref only by EUP
    # approximation ulps).
    assert jnp.allclose(out, ref, atol=1e-4, rtol=1e-4), (out, ref)

    print("KERNEL_OK")
</pallas_src>

<mosaic_0001>
module attributes {stable_mosaic.version = 11 : i64} {
  func.func @_lstm_disc_kernel(%arg0: memref<16x16xf32, #tpu.memory_space<vmem>>, %arg1: memref<16x128xf32, #tpu.memory_space<vmem>>, %arg2: memref<32x128xf32, #tpu.memory_space<vmem>>, %arg3: memref<1x128xf32, #tpu.memory_space<vmem>>, %arg4: memref<32x4xf32, #tpu.memory_space<vmem>>, %arg5: memref<1x4xf32, #tpu.memory_space<vmem>>, %arg6: memref<2x4xf32, #tpu.memory_space<vmem>>) attributes {dimension_semantics = [], scalar_prefetch = 0 : i64, scratch_operands = 0 : i64, tpu.core_type = #tpu.core_type<tc>} {
    %c0 = arith.constant 0 : index
    %c0_0 = arith.constant 0 : index
    %0 = vector.load %arg0[%c0, %c0_0] : memref<16x16xf32, #tpu.memory_space<vmem>>, vector<16x16xf32>
    %c0_1 = arith.constant 0 : index
    %c0_2 = arith.constant 0 : index
    %1 = vector.load %arg1[%c0_1, %c0_2] : memref<16x128xf32, #tpu.memory_space<vmem>>, vector<16x128xf32>
    %cst = arith.constant dense<0.000000e+00> : vector<16x128xf32>
    %2 = tpu.matmul %0, %1, %cst {dimension_numbers = #tpu.dot_dimension_numbers<[1], [0], [0], [1], [0, 0, 1, 1], [], []>} : vector<16x16xf32>, vector<16x128xf32>, vector<16x128xf32> -> vector<16x128xf32>
    %c0_3 = arith.constant 0 : index
    %c0_4 = arith.constant 0 : index
    %3 = vector.load %arg3[%c0_3, %c0_4] : memref<1x128xf32, #tpu.memory_space<vmem>>, vector<1x128xf32>
    %4 = vector.broadcast %3 : vector<1x128xf32> to vector<16x128xf32>
    %5 = arith.addf %2, %4 : vector<16x128xf32>
    %c0_5 = arith.constant 0 : index
    %c0_6 = arith.constant 0 : index
    %6 = vector.load %arg2[%c0_5, %c0_6] : memref<32x128xf32, #tpu.memory_space<vmem>>, vector<32x128xf32>
    %7 = tpu.iota {dimensions = array<i32: 1>} : vector<2x128xi32>
    %c64_i32 = arith.constant 64 : i32
    %8 = vector.broadcast %c64_i32 : i32 to vector<2x128xi32>
    %9 = arith.cmpi sge, %7, %8 : vector<2x128xi32>
    %c96_i32 = arith.constant 96 : i32
    %10 = vector.broadcast %c96_i32 : i32 to vector<2x128xi32>
    %11 = arith.cmpi slt, %7, %10 : vector<2x128xi32>
    %12 = arith.andi %9, %11 : vector<2x128xi1>
    %cst_7 = arith.constant 0.000000e+00 : f32
    %13 = vector.broadcast %cst_7 : f32 to vector<2x32xf32>
    %cst_8 = arith.constant 0.000000e+00 : f32
    %14 = vector.broadcast %cst_8 : f32 to vector<2x32xf32>
    %15 = vector.extract_strided_slice %5 {offsets = [0, 0], sizes = [2, 128], strides = [1, 1]} : vector<16x128xf32> to vector<2x128xf32>
    %cst_9 = arith.constant dense<0.000000e+00> : vector<2x128xf32>
    %16 = tpu.matmul %13, %6, %cst_9 {dimension_numbers = #tpu.dot_dimension_numbers<[1], [0], [0], [1], [0, 0, 1, 1], [], []>} : vector<2x32xf32>, vector<32x128xf32>, vector<2x128xf32> -> vector<2x128xf32>
    %17 = arith.addf %15, %16 : vector<2x128xf32>
    %cst_10 = arith.constant 5.000000e-01 : f32
    %18 = vector.broadcast %cst_10 : f32 to vector<2x128xf32>
    %19 = arith.mulf %18, %17 : vector<2x128xf32>
    %20 = arith.select %12, %17, %19 : vector<2x128xi1>, vector<2x128xf32>
    %21 = math.tanh %20 : vector<2x128xf32>
    %cst_11 = arith.constant 5.000000e-01 : f32
    %22 = vector.broadcast %cst_11 : f32 to vector<2x128xf32>
    %23 = arith.mulf %22, %21 : vector<2x128xf32>
    %cst_12 = arith.constant 5.000000e-01 : f32
    %24 = vector.broadcast %cst_12 : f32 to vector<2x128xf32>
    %25 = arith.addf %23, %24 : vector<2x128xf32>
    %26 = arith.select %12, %21, %25 : vector<2x128xi1>, vector<2x128xf32>
    %27 = vector.extract_strided_slice %26 {offsets = [0, 0], sizes = [2, 32], strides = [1, 1]} : vector<2x128xf32> to vector<2x32xf32>
    %28 = vector.extract_strided_slice %26 {offsets = [0, 32], sizes = [2, 32], strides = [1, 1]} : vector<2x128xf32> to vector<2x32xf32>
    %29 = vector.extract_strided_slice %26 {offsets = [0, 64], sizes = [2, 32], strides = [1, 1]} : vector<2x128xf32> to vector<2x32xf32>
    %30 = vector.extract_strided_slice %26 {offsets = [0, 96], sizes = [2, 32], strides = [1, 1]} : vector<2x128xf32> to vector<2x32xf32>
    %31 = arith.mulf %28, %14 : vector<2x32xf32>
    %32 = arith.mulf %27, %29 : vector<2x32xf32>
    %33 = arith.addf %31, %32 : vector<2x32xf32>
    %34 = math.tanh %33 : vector<2x32xf32>
    %35 = arith.mulf %30, %34 : vector<2x32xf32>
    %36 = vector.extract_strided_slice %5 {offsets = [2, 0], sizes = [2, 128], strides = [1, 1]} : vector<16x128xf32> to vector<2x128xf32>
    %cst_13 = arith.constant dense<0.000000e+00> : vector<2x128xf32>
    %37 = tpu.matmul %35, %6, %cst_13 {dimension_numbers = #tpu.dot_dimension_numbers<[1], [0], [0], [1], [0, 0, 1, 1], [], []>} : vector<2x32xf32>, vector<32x128xf32>, vector<2x128xf32> -> vector<2x128xf32>
    %38 = arith.addf %36, %37 : vector<2x128xf32>
    %cst_14 = arith.constant 5.000000e-01 : f32
    %39 = vector.broadcast %cst_14 : f32 to vector<2x128xf32>
    %40 = arith.mulf %39, %38 : vector<2x128xf32>
    %41 = arith.select %12, %38, %40 : vector<2x128xi1>, vector<2x128xf32>
    %42 = math.tanh %41 : vector<2x128xf32>
    %cst_15 = arith.constant 5.000000e-01 : f32
    %43 = vector.broadcast %cst_15 : f32 to vector<2x128xf32>
    %44 = arith.mulf %43, %42 : vector<2x128xf32>
    %cst_16 = arith.constant 5.000000e-01 : f32
    %45 = vector.broadcast %cst_16 : f32 to vector<2x128xf32>
    %46 = arith.addf %44, %45 : vector<2x128xf32>
    %47 = arith.select %12, %42, %46 : vector<2x128xi1>, vector<2x128xf32>
    %48 = vector.extract_strided_slice %47 {offsets = [0, 0], sizes = [2, 32], strides = [1, 1]} : vector<2x128xf32> to vector<2x32xf32>
    %49 = vector.extract_strided_slice %47 {offsets = [0, 32], sizes = [2, 32], strides = [1, 1]} : vector<2x128xf32> to vector<2x32xf32>
    %50 = vector.extract_strided_slice %47 {offsets = [0, 64], sizes = [2, 32], strides = [1, 1]} : vector<2x128xf32> to vector<2x32xf32>
    %51 = vector.extract_strided_slice %47 {offsets = [0, 96], sizes = [2, 32], strides = [1, 1]} : vector<2x128xf32> to vector<2x32xf32>
    %52 = arith.mulf %49, %33 : vector<2x32xf32>
    %53 = arith.mulf %48, %50 : vector<2x32xf32>
    %54 = arith.addf %52, %53 : vector<2x32xf32>
    %55 = math.tanh %54 : vector<2x32xf32>
    %56 = arith.mulf %51, %55 : vector<2x32xf32>
    %57 = vector.extract_strided_slice %5 {offsets = [4, 0], sizes = [2, 128], strides = [1, 1]} : vector<16x128xf32> to vector<2x128xf32>
    %cst_17 = arith.constant dense<0.000000e+00> : vector<2x128xf32>
    %58 = tpu.matmul %56, %6, %cst_17 {dimension_numbers = #tpu.dot_dimension_numbers<[1], [0], [0], [1], [0, 0, 1, 1], [], []>} : vector<2x32xf32>, vector<32x128xf32>, vector<2x128xf32> -> vector<2x128xf32>
    %59 = arith.addf %57, %58 : vector<2x128xf32>
    %cst_18 = arith.constant 5.000000e-01 : f32
    %60 = vector.broadcast %cst_18 : f32 to vector<2x128xf32>
    %61 = arith.mulf %60, %59 : vector<2x128xf32>
    %62 = arith.select %12, %59, %61 : vector<2x128xi1>, vector<2x128xf32>
    %63 = math.tanh %62 : vector<2x128xf32>
    %cst_19 = arith.constant 5.000000e-01 : f32
    %64 = vector.broadcast %cst_19 : f32 to vector<2x128xf32>
    %65 = arith.mulf %64, %63 : vector<2x128xf32>
    %cst_20 = arith.constant 5.000000e-01 : f32
    %66 = vector.broadcast %cst_20 : f32 to vector<2x128xf32>
    %67 = arith.addf %65, %66 : vector<2x128xf32>
    %68 = arith.select %12, %63, %67 : vector<2x128xi1>, vector<2x128xf32>
    %69 = vector.extract_strided_slice %68 {offsets = [0, 0], sizes = [2, 32], strides = [1, 1]} : vector<2x128xf32> to vector<2x32xf32>
    %70 = vector.extract_strided_slice %68 {offsets = [0, 32], sizes = [2, 32], strides = [1, 1]} : vector<2x128xf32> to vector<2x32xf32>
    %71 = vector.extract_strided_slice %68 {offsets = [0, 64], sizes = [2, 32], strides = [1, 1]} : vector<2x128xf32> to vector<2x32xf32>
    %72 = vector.extract_strided_slice %68 {offsets = [0, 96], sizes = [2, 32], strides = [1, 1]} : vector<2x128xf32> to vector<2x32xf32>
    %73 = arith.mulf %70, %54 : vector<2x32xf32>
    %74 = arith.mulf %69, %71 : vector<2x32xf32>
    %75 = arith.addf %73, %74 : vector<2x32xf32>
    %76 = math.tanh %75 : vector<2x32xf32>
    %77 = arith.mulf %72, %76 : vector<2x32xf32>
    %78 = vector.extract_strided_slice %5 {offsets = [6, 0], sizes = [2, 128], strides = [1, 1]} : vector<16x128xf32> to vector<2x128xf32>
    %cst_21 = arith.constant dense<0.000000e+00> : vector<2x128xf32>
    %79 = tpu.matmul %77, %6, %cst_21 {dimension_numbers = #tpu.dot_dimension_numbers<[1], [0], [0], [1], [0, 0, 1, 1], [], []>} : vector<2x32xf32>, vector<32x128xf32>, vector<2x128xf32> -> vector<2x128xf32>
    %80 = arith.addf %78, %79 : vector<2x128xf32>
    %cst_22 = arith.constant 5.000000e-01 : f32
    %81 = vector.broadcast %cst_22 : f32 to vector<2x128xf32>
    %82 = arith.mulf %81, %80 : vector<2x128xf32>
    %83 = arith.select %12, %80, %82 : vector<2x128xi1>, vector<2x128xf32>
    %84 = math.tanh %83 : vector<2x128xf32>
    %cst_23 = arith.constant 5.000000e-01 : f32
    %85 = vector.broadcast %cst_23 : f32 to vector<2x128xf32>
    %86 = arith.mulf %85, %84 : vector<2x128xf32>
    %cst_24 = arith.constant 5.000000e-01 : f32
    %87 = vector.broadcast %cst_24 : f32 to vector<2x128xf32>
    %88 = arith.addf %86, %87 : vector<2x128xf32>
    %89 = arith.select %12, %84, %88 : vector<2x128xi1>, vector<2x128xf32>
    %90 = vector.extract_strided_slice %89 {offsets = [0, 0], sizes = [2, 32], strides = [1, 1]} : vector<2x128xf32> to vector<2x32xf32>
    %91 = vector.extract_strided_slice %89 {offsets = [0, 32], sizes = [2, 32], strides = [1, 1]} : vector<2x128xf32> to vector<2x32xf32>
    %92 = vector.extract_strided_slice %89 {offsets = [0, 64], sizes = [2, 32], strides = [1, 1]} : vector<2x128xf32> to vector<2x32xf32>
    %93 = vector.extract_strided_slice %89 {offsets = [0, 96], sizes = [2, 32], strides = [1, 1]} : vector<2x128xf32> to vector<2x32xf32>
    %94 = arith.mulf %91, %75 : vector<2x32xf32>
    %95 = arith.mulf %90, %92 : vector<2x32xf32>
    %96 = arith.addf %94, %95 : vector<2x32xf32>
    %97 = math.tanh %96 : vector<2x32xf32>
    %98 = arith.mulf %93, %97 : vector<2x32xf32>
    %99 = vector.extract_strided_slice %5 {offsets = [8, 0], sizes = [2, 128], strides = [1, 1]} : vector<16x128xf32> to vector<2x128xf32>
    %cst_25 = arith.constant dense<0.000000e+00> : vector<2x128xf32>
    %100 = tpu.matmul %98, %6, %cst_25 {dimension_numbers = #tpu.dot_dimension_numbers<[1], [0], [0], [1], [0, 0, 1, 1], [], []>} : vector<2x32xf32>, vector<32x128xf32>, vector<2x128xf32> -> vector<2x128xf32>
    %101 = arith.addf %99, %100 : vector<2x128xf32>
    %cst_26 = arith.constant 5.000000e-01 : f32
    %102 = vector.broadcast %cst_26 : f32 to vector<2x128xf32>
    %103 = arith.mulf %102, %101 : vector<2x128xf32>
    %104 = arith.select %12, %101, %103 : vector<2x128xi1>, vector<2x128xf32>
    %105 = math.tanh %104 : vector<2x128xf32>
    %cst_27 = arith.constant 5.000000e-01 : f32
    %106 = vector.broadcast %cst_27 : f32 to vector<2x128xf32>
    %107 = arith.mulf %106, %105 : vector<2x128xf32>
    %cst_28 = arith.constant 5.000000e-01 : f32
    %108 = vector.broadcast %cst_28 : f32 to vector<2x128xf32>
    %109 = arith.addf %107, %108 : vector<2x128xf32>
    %110 = arith.select %12, %105, %109 : vector<2x128xi1>, vector<2x128xf32>
    %111 = vector.extract_strided_slice %110 {offsets = [0, 0], sizes = [2, 32], strides = [1, 1]} : vector<2x128xf32> to vector<2x32xf32>
    %112 = vector.extract_strided_slice %110 {offsets = [0, 32], sizes = [2, 32], strides = [1, 1]} : vector<2x128xf32> to vector<2x32xf32>
    %113 = vector.extract_strided_slice %110 {offsets = [0, 64], sizes = [2, 32], strides = [1, 1]} : vector<2x128xf32> to vector<2x32xf32>
    %114 = vector.extract_strided_slice %110 {offsets = [0, 96], sizes = [2, 32], strides = [1, 1]} : vector<2x128xf32> to vector<2x32xf32>
    %115 = arith.mulf %112, %96 : vector<2x32xf32>
    %116 = arith.mulf %111, %113 : vector<2x32xf32>
    %117 = arith.addf %115, %116 : vector<2x32xf32>
    %118 = math.tanh %117 : vector<2x32xf32>
    %119 = arith.mulf %114, %118 : vector<2x32xf32>
    %120 = vector.extract_strided_slice %5 {offsets = [10, 0], sizes = [2, 128], strides = [1, 1]} : vector<16x128xf32> to vector<2x128xf32>
    %cst_29 = arith.constant dense<0.000000e+00> : vector<2x128xf32>
    %121 = tpu.matmul %119, %6, %cst_29 {dimension_numbers = #tpu.dot_dimension_numbers<[1], [0], [0], [1], [0, 0, 1, 1], [], []>} : vector<2x32xf32>, vector<32x128xf32>, vector<2x128xf32> -> vector<2x128xf32>
    %122 = arith.addf %120, %121 : vector<2x128xf32>
    %cst_30 = arith.constant 5.000000e-01 : f32
    %123 = vector.broadcast %cst_30 : f32 to vector<2x128xf32>
    %124 = arith.mulf %123, %122 : vector<2x128xf32>
    %125 = arith.select %12, %122, %124 : vector<2x128xi1>, vector<2x128xf32>
    %126 = math.tanh %125 : vector<2x128xf32>
    %cst_31 = arith.constant 5.000000e-01 : f32
    %127 = vector.broadcast %cst_31 : f32 to vector<2x128xf32>
    %128 = arith.mulf %127, %126 : vector<2x128xf32>
    %cst_32 = arith.constant 5.000000e-01 : f32
    %129 = vector.broadcast %cst_32 : f32 to vector<2x128xf32>
    %130 = arith.addf %128, %129 : vector<2x128xf32>
    %131 = arith.select %12, %126, %130 : vector<2x128xi1>, vector<2x128xf32>
    %132 = vector.extract_strided_slice %131 {offsets = [0, 0], sizes = [2, 32], strides = [1, 1]} : vector<2x128xf32> to vector<2x32xf32>
    %133 = vector.extract_strided_slice %131 {offsets = [0, 32], sizes = [2, 32], strides = [1, 1]} : vector<2x128xf32> to vector<2x32xf32>
    %134 = vector.extract_strided_slice %131 {offsets = [0, 64], sizes = [2, 32], strides = [1, 1]} : vector<2x128xf32> to vector<2x32xf32>
    %135 = vector.extract_strided_slice %131 {offsets = [0, 96], sizes = [2, 32], strides = [1, 1]} : vector<2x128xf32> to vector<2x32xf32>
    %136 = arith.mulf %133, %117 : vector<2x32xf32>
    %137 = arith.mulf %132, %134 : vector<2x32xf32>
    %138 = arith.addf %136, %137 : vector<2x32xf32>
    %139 = math.tanh %138 : vector<2x32xf32>
    %140 = arith.mulf %135, %139 : vector<2x32xf32>
    %141 = vector.extract_strided_slice %5 {offsets = [12, 0], sizes = [2, 128], strides = [1, 1]} : vector<16x128xf32> to vector<2x128xf32>
    %cst_33 = arith.constant dense<0.000000e+00> : vector<2x128xf32>
    %142 = tpu.matmul %140, %6, %cst_33 {dimension_numbers = #tpu.dot_dimension_numbers<[1], [0], [0], [1], [0, 0, 1, 1], [], []>} : vector<2x32xf32>, vector<32x128xf32>, vector<2x128xf32> -> vector<2x128xf32>
    %143 = arith.addf %141, %142 : vector<2x128xf32>
    %cst_34 = arith.constant 5.000000e-01 : f32
    %144 = vector.broadcast %cst_34 : f32 to vector<2x128xf32>
    %145 = arith.mulf %144, %143 : vector<2x128xf32>
    %146 = arith.select %12, %143, %145 : vector<2x128xi1>, vector<2x128xf32>
    %147 = math.tanh %146 : vector<2x128xf32>
    %cst_35 = arith.constant 5.000000e-01 : f32
    %148 = vector.broadcast %cst_35 : f32 to vector<2x128xf32>
    %149 = arith.mulf %148, %147 : vector<2x128xf32>
    %cst_36 = arith.constant 5.000000e-01 : f32
    %150 = vector.broadcast %cst_36 : f32 to vector<2x128xf32>
    %151 = arith.addf %149, %150 : vector<2x128xf32>
    %152 = arith.select %12, %147, %151 : vector<2x128xi1>, vector<2x128xf32>
    %153 = vector.extract_strided_slice %152 {offsets = [0, 0], sizes = [2, 32], strides = [1, 1]} : vector<2x128xf32> to vector<2x32xf32>
    %154 = vector.extract_strided_slice %152 {offsets = [0, 32], sizes = [2, 32], strides = [1, 1]} : vector<2x128xf32> to vector<2x32xf32>
    %155 = vector.extract_strided_slice %152 {offsets = [0, 64], sizes = [2, 32], strides = [1, 1]} : vector<2x128xf32> to vector<2x32xf32>
    %156 = vector.extract_strided_slice %152 {offsets = [0, 96], sizes = [2, 32], strides = [1, 1]} : vector<2x128xf32> to vector<2x32xf32>
    %157 = arith.mulf %154, %138 : vector<2x32xf32>
    %158 = arith.mulf %153, %155 : vector<2x32xf32>
    %159 = arith.addf %157, %158 : vector<2x32xf32>
    %160 = math.tanh %159 : vector<2x32xf32>
    %161 = arith.mulf %156, %160 : vector<2x32xf32>
    %162 = vector.extract_strided_slice %5 {offsets = [14, 0], sizes = [2, 128], strides = [1, 1]} : vector<16x128xf32> to vector<2x128xf32>
    %cst_37 = arith.constant dense<0.000000e+00> : vector<2x128xf32>
    %163 = tpu.matmul %161, %6, %cst_37 {dimension_numbers = #tpu.dot_dimension_numbers<[1], [0], [0], [1], [0, 0, 1, 1], [], []>} : vector<2x32xf32>, vector<32x128xf32>, vector<2x128xf32> -> vector<2x128xf32>
    %164 = arith.addf %162, %163 : vector<2x128xf32>
    %cst_38 = arith.constant 5.000000e-01 : f32
    %165 = vector.broadcast %cst_38 : f32 to vector<2x128xf32>
    %166 = arith.mulf %165, %164 : vector<2x128xf32>
    %167 = arith.select %12, %164, %166 : vector<2x128xi1>, vector<2x128xf32>
    %168 = math.tanh %167 : vector<2x128xf32>
    %cst_39 = arith.constant 5.000000e-01 : f32
    %169 = vector.broadcast %cst_39 : f32 to vector<2x128xf32>
    %170 = arith.mulf %169, %168 : vector<2x128xf32>
    %cst_40 = arith.constant 5.000000e-01 : f32
    %171 = vector.broadcast %cst_40 : f32 to vector<2x128xf32>
    %172 = arith.addf %170, %171 : vector<2x128xf32>
    %173 = arith.select %12, %168, %172 : vector<2x128xi1>, vector<2x128xf32>
    %174 = vector.extract_strided_slice %173 {offsets = [0, 0], sizes = [2, 32], strides = [1, 1]} : vector<2x128xf32> to vector<2x32xf32>
    %175 = vector.extract_strided_slice %173 {offsets = [0, 32], sizes = [2, 32], strides = [1, 1]} : vector<2x128xf32> to vector<2x32xf32>
    %176 = vector.extract_strided_slice %173 {offsets = [0, 64], sizes = [2, 32], strides = [1, 1]} : vector<2x128xf32> to vector<2x32xf32>
    %177 = vector.extract_strided_slice %173 {offsets = [0, 96], sizes = [2, 32], strides = [1, 1]} : vector<2x128xf32> to vector<2x32xf32>
    %178 = arith.mulf %175, %159 : vector<2x32xf32>
    %179 = arith.mulf %174, %176 : vector<2x32xf32>
    %180 = arith.addf %178, %179 : vector<2x32xf32>
    %181 = math.tanh %180 : vector<2x32xf32>
    %182 = arith.mulf %177, %181 : vector<2x32xf32>
    %c0_41 = arith.constant 0 : index
    %c0_42 = arith.constant 0 : index
    %183 = vector.load %arg4[%c0_41, %c0_42] : memref<32x4xf32, #tpu.memory_space<vmem>>, vector<32x4xf32>
    %cst_43 = arith.constant dense<0.000000e+00> : vector<2x4xf32>
    %184 = tpu.matmul %182, %183, %cst_43 {dimension_numbers = #tpu.dot_dimension_numbers<[1], [0], [0], [1], [0, 0, 1, 1], [], []>} : vector<2x32xf32>, vector<32x4xf32>, vector<2x4xf32> -> vector<2x4xf32>
    %c0_44 = arith.constant 0 : index
    %c0_45 = arith.constant 0 : index
    %185 = vector.load %arg5[%c0_44, %c0_45] : memref<1x4xf32, #tpu.memory_space<vmem>>, vector<1x4xf32>
    %186 = vector.broadcast %185 : vector<1x4xf32> to vector<2x4xf32>
    %187 = arith.addf %184, %186 : vector<2x4xf32>
    %cst_46 = arith.constant dense<0xFF800000> : vector<2xf32>
    %188 = vector.multi_reduction <maximumf>, %187, %cst_46 [1] : vector<2x4xf32> to vector<2xf32>
    %189 = vector.shape_cast %188 : vector<2xf32> to vector<2x1xf32>
    %190 = vector.broadcast %189 : vector<2x1xf32> to vector<2x4xf32>
    %191 = arith.subf %187, %190 : vector<2x4xf32>
    %192 = math.exp %191 : vector<2x4xf32>
    %cst_47 = arith.constant dense<0.000000e+00> : vector<2xf32>
    %193 = vector.multi_reduction <add>, %192, %cst_47 [1] : vector<2x4xf32> to vector<2xf32>
    %194 = vector.shape_cast %193 : vector<2xf32> to vector<2x1xf32>
    %195 = math.log %194 : vector<2x1xf32>
    %196 = vector.broadcast %195 : vector<2x1xf32> to vector<2x4xf32>
    %197 = arith.subf %191, %196 : vector<2x4xf32>
    %c0_48 = arith.constant 0 : index
    %c0_49 = arith.constant 0 : index
    %198 = vector.load %arg6[%c0_48, %c0_49] : memref<2x4xf32, #tpu.memory_space<vmem>>, vector<2x4xf32>
    tpu.vector_store %arg6[%c0_48, %c0_49], %197 {strides = array<i32>} : memref<2x4xf32, #tpu.memory_space<vmem>>, vector<2x4xf32>,
    return
  }
}

</mosaic_0001>

<bundles_post_ra>
// kernel: lstm_discriminator.1
= control target key start
LH: loop header
LB: loop body
LE: loop exit
PB: predicated region body
PF: predicated region fallthrough
CT: control target
= control target key end

     0   :  { %vm32_vm0 = vcmask 130048   ;;  %s829_s0 = inlined_call_operand.vmem [shape: f32[16,16], index: 0, kind: input, shape index: {}]   ;;  %s830_s1 = inlined_call_operand.vmem [shape: f32[16,128], index: 1, kind: input, shape index: {}]   ;;  %s831_s2 = inlined_call_operand.vmem [shape: f32[32,128], index: 2, kind: input, shape index: {}]   ;;  %s832_s3 = inlined_call_operand.vmem [shape: f32[1,128], index: 3, kind: input, shape index: {}]   ;;  %s833_s4 = inlined_call_operand.vmem [shape: f32[32,4], index: 4, kind: input, shape index: {}]   ;;  %s834_s5 = inlined_call_operand.vmem [shape: f32[1,4], index: 5, kind: input, shape index: {}]   ;;  %s835_s6 = inlined_call_operand.hbm [shape: f32[2,4], index: 6, kind: output, shape index: {}]  }
   0x1   :  { %v65_v0 = vld [vmem:[%s831_s2 + $0x18] sm:$0xff]  ;;  %v27_v1 = vld [vmem:[%s830_s1 + $0x8] sm:$0xff]  ;;  %v64_v2 = vld [vmem:[%s831_s2 + $0x10] sm:$0xff] }
   0x2   :  { %87 = vmatpush.msra.mxu1 %v65_v0  ;;  %53 = vmatpush.msra.mxu0 %v27_v1  ;;  %v26_v3 = vld [vmem:[%s830_s1] sm:$0xff]  ;;  %v63_v5 = vld [vmem:[%s831_s2 + $0x8] sm:$0xff] }
   0x3   :  { %v24_v4 = vld [vmem:[%s829_s0] sm:$0xff]  ;;  %136 = vmatpush.msra.mxu2 %v65_v0  ;;  %192 = vmatpush.msra.mxu3 %v65_v0 }
   0x4   :  { %88 = vmatpush.msra.mxu1 %v64_v2  ;;  %54 = vmatpush.msra.mxu0 %v26_v3 }
   0x5   :  { %11 = vsyncpa [#allocation3], 0  ;;  %570 = vmatmul.msk.f32.vlgmr.msra.gmra.mxu0 %vm32_vm0, %v24_v4  ;;  %v62_v6 = vld [vmem:[%s831_s2] sm:$0xff]  ;;  %137 = vmatpush.msra.mxu2 %v64_v2  ;;  %v648_v7 = vmov 0.0   ;;  %v66_v8 = vlaneseq  ;;  %s650_s11 = smov 32   ;;  %vm71_vm4 = vcmask 261120  }
   0x6   :  { %89 = vmatpush.msra.mxu1 %v63_v5  ;;  %193 = vmatpush.msra.mxu3 %v64_v2  ;;  %v712_v9 = vld [vmem:[%s832_s3] ss:$0 sm:$0xff]  ;;  %s649_s3 = smov 64   ;;  %v508_v15 = vld [vmem:[%s833_s4 + $0x10] sm:$0xff]  ;;  %vm540_vm5 = vcmask 25600   ;;  %s561_s25 = sshll.u32 %s835_s6, 4  ;;  %s562_s25 = int_to_ptr.hbm [resolvable:$true] %s561_s25 }
   0x7   :  { %138 = vmatpush.msra.mxu2 %v63_v5  ;;  %412 = vmatpush.msrb.mxu0 %v65_v0  ;;  %v67_v10 = vand.u32 127, %v66_v8 }
   0x8   :  { %90 = vmatpush.msra.mxu1 %v62_v6  ;;  %194 = vmatpush.msra.mxu3 %v63_v5 }
   0x9   :  { %91 = vmatmul.f32.vlgmr.msra.gmra.mxu1 %v648_v7  ;;  %139 = vmatpush.msra.mxu2 %v62_v6  ;;  %vm68_vm1 = vcmp.ge.s32.totalorder %v67_v10, 64  ;;  %vm69_vm2 = vcmp.lt.s32.totalorder %v67_v10, 96 }
   0xa   :  { %195 = vmatpush.msra.mxu3 %v62_v6  ;;  %248 = vmatpush.msrb.mxu1 %v65_v0  ;;  %vm718_vm3 = vmand %vm68_vm1, %vm69_vm2 }
   0xb   :  { %304 = vmatpush.msrb.mxu2 %v65_v0  ;;  %413 = vmatpush.msrb.mxu0 %v64_v2 }
   0xc   :  { %356 = vmatpush.msrb.mxu3 %v65_v0  ;;  %249 = vmatpush.msrb.mxu1 %v64_v2 }
   0xd   :  { %305 = vmatpush.msrb.mxu2 %v64_v2  ;;  %414 = vmatpush.msrb.mxu0 %v63_v5 }
   0xe   :  { %357 = vmatpush.msrb.mxu3 %v64_v2  ;;  %250 = vmatpush.msrb.mxu1 %v63_v5 }
   0xf   :  { %306 = vmatpush.msrb.mxu2 %v63_v5  ;;  %415 = vmatpush.msrb.mxu0 %v62_v6 }
  0x10   :  { %358 = vmatpush.msrb.mxu3 %v63_v5  ;;  %251 = vmatpush.msrb.mxu1 %v62_v6 }
  0x11   :  { %307 = vmatpush.msrb.mxu2 %v62_v6 }
  0x12   :  { %359 = vmatpush.msrb.mxu3 %v62_v6  ;;  %468 = vmatpush.msra.mxu1 %v65_v0 }
  0x14   :  { %469 = vmatpush.msra.mxu1 %v64_v2 }
  0x16   :  { %470 = vmatpush.msra.mxu1 %v63_v5 }
  0x18   :  { %471 = vmatpush.msra.mxu1 %v62_v6 }
  0x82   :  { %v56_v11 = vpop.f32.mrf.mxu0 }
  0x83   :  { %v715_v12 = vadd.f32 %v712_v9, %v56_v11 }
  0x86   :  { %v92_v13 = vpop.f32.mrf.mxu1 }
  0x87   :  { %v95_v14 = vadd.f32 %v92_v13, %v715_v12 }
  0x89   :  { %v96_v16 = vmul.f32 0.5, %v95_v14 }
  0x8b   :  { %v97_v17 = vsel %vm718_vm3, %v95_v14, %v96_v16 }
  0x8c   :  { %586 = vtanh.f32 %v97_v17 }
  0x92   :  { %v587_v18 = vpop.eup %586 }
  0x93   :  { %v99_v19 = vmul.f32 0.5, %v587_v18 }
  0x95   :  { %v100_v20 = vadd.f32 0.5, %v99_v19 }
  0x97   :  { %v101_v21 = vsel %vm718_vm3, %v587_v18, %v100_v20 }
  0x98   :  { %104 = vrot.lane.b32.xlu0 %v101_v21, %s649_s3  ;;  %v102_v24 = vmul.f32 0.0, %v101_v21 }
 0x10a   :  { %v105_v22 = vpop.permute.xlu0 %104 }
 0x10b   :  { %v107_v23 = vmul.f32 %v105_v22, %v101_v21 }
 0x10d   :  { %109 = vrot.lane.b32.xlu0 %v107_v23, %s650_s11 }
 0x17f   :  { %v110_v25 = vpop.permute.xlu0 %109 }
 0x180   :  { %v112_v26 = vadd.f32 %v110_v25, %v102_v24 }
 0x182   :  { %588 = vtanh.f32 %v112_v26  ;;  %v155_v42 = vrot.slane %v112_v26, 6 }
 0x188   :  { %v589_v27 = vpop.eup %588 }
 0x189   :  { %115 = vrot.lane.b32.xlu1 %v589_v27, %s649_s3 }
 0x1fb   :  { %v116_v28 = vpop.permute.xlu1 %115 }
 0x1fc   :  { %v118_v29 = vmul.f32 %v116_v28, %v101_v21  ;;  %v25_v28 = vld [vmem:[%s829_s0 + $0x8] sm:$0xff] }
 0x1fd   :  { %571 = vmatmul.msk.f32.gmra.mxu0 %vm32_vm0, %v25_v28 }
 0x1fe   :  { %120 = vrot.lane.b32.xlu1 %v118_v29, %s650_s11 }
 0x270   :  { %v121_v30 = vpop.permute.xlu1 %120 }
 0x271   :  { %572 = vmatmul.msk.f32.vlgmr.msra.gmra.mxu2 %vm71_vm4, %v121_v30 }
 0x27a   :  { %v59_v30 = vpop.f32.mrf.mxu0 }
 0x2f4   :  { %v141_v31 = vpop.f32.mrf.mxu2 }
 0x2f5   :  { %v145_v32 = vrot.slane %v141_v31, 6  ;;  %v766_v31 = vadd.f32 %v712_v9, %v59_v30 }
 0x2f7   :  { %v147_v33 = vadd.f32 %v145_v32, %v715_v12 }
 0x2f9   :  { %v148_v34 = vmul.f32 0.5, %v147_v33 }
 0x2fb   :  { %v149_v35 = vsel %vm718_vm3, %v147_v33, %v148_v34 }
 0x2fc   :  { %590 = vtanh.f32 %v149_v35 }
 0x302   :  { %v591_v36 = vpop.eup %590 }
 0x303   :  { %v151_v37 = vmul.f32 0.5, %v591_v36 }
 0x305   :  { %v152_v38 = vadd.f32 0.5, %v151_v37 }
 0x307   :  { %v153_v39 = vsel %vm718_vm3, %v591_v36, %v152_v38 }
 0x308   :  { %159 = vrot.lane.b32.xlu2 %v153_v39, %s649_s3  ;;  %v157_v43 = vmul.f32 %v155_v42, %v153_v39 }
 0x362   :  { %v160_v40 = vpop.permute.xlu2 %159 }
 0x363   :  { %v162_v41 = vmul.f32 %v160_v40, %v153_v39 }
 0x365   :  { %164 = vrot.lane.b32.xlu2 %v162_v41, %s650_s11 }
 0x3bf   :  { %v165_v44 = vpop.permute.xlu2 %164 }
 0x3c0   :  { %v167_v45 = vadd.f32 %v165_v44, %v157_v43 }
 0x3c2   :  { %592 = vtanh.f32 %v167_v45  ;;  %v211_v62 = vrot.slane %v167_v45, 6 }
 0x3c8   :  { %v593_v46 = vpop.eup %592 }
 0x3c9   :  { %170 = vrot.lane.b32.xlu0 %v593_v46, %s649_s3 }
 0x43b   :  { %v171_v47 = vpop.permute.xlu0 %170 }
 0x43c   :  { %v173_v48 = vmul.f32 %v171_v47, %v153_v39 }
 0x43e   :  { %v175_v49 = vrot.slane %v173_v48, 2 }
 0x440   :  { %176 = vrot.lane.b32.xlu1 %v175_v49, %s650_s11 }
 0x4b2   :  { %v177_v50 = vpop.permute.xlu1 %176 }
 0x4b3   :  { %573 = vmatmul.msk.f32.vlgmr.msra.gmra.mxu3 %vm71_vm4, %v177_v50 }
 0x536   :  { %v197_v51 = vpop.f32.mrf.mxu3 }
 0x537   :  { %v201_v52 = vrot.slane %v197_v51, 4 }
 0x539   :  { %v203_v53 = vadd.f32 %v201_v52, %v715_v12 }
 0x53b   :  { %v204_v54 = vmul.f32 0.5, %v203_v53 }
 0x53d   :  { %v205_v55 = vsel %vm718_vm3, %v203_v53, %v204_v54 }
 0x53e   :  { %594 = vtanh.f32 %v205_v55 }
 0x544   :  { %v595_v56 = vpop.eup %594 }
 0x545   :  { %v207_v57 = vmul.f32 0.5, %v595_v56 }
 0x547   :  { %v208_v58 = vadd.f32 0.5, %v207_v57 }
 0x549   :  { %v209_v59 = vsel %vm718_vm3, %v595_v56, %v208_v58 }
 0x54a   :  { %215 = vrot.lane.b32.xlu2 %v209_v59, %s649_s3  ;;  %v213_v63 = vmul.f32 %v211_v62, %v209_v59 }
 0x5a4   :  { %v216_v60 = vpop.permute.xlu2 %215 }
 0x5a5   :  { %v218_v61 = vmul.f32 %v216_v60, %v209_v59 }
 0x5a7   :  { %220 = vrot.lane.b32.xlu0 %v218_v61, %s650_s11 }
 0x619   :  { %v221_v0 = vpop.permute.xlu0 %220 }
 0x61a   :  { %v223_v1 = vadd.f32 %v221_v0, %v213_v63 }
 0x61c   :  { %596 = vtanh.f32 %v223_v1  ;;  %v267_v21 = vrot.slane %v223_v1, 6 }
 0x622   :  { %v597_v2 = vpop.eup %596 }
 0x623   :  { %226 = vrot.lane.b32.xlu1 %v597_v2, %s649_s3 }
 0x695   :  { %v227_v3 = vpop.permute.xlu1 %226 }
 0x696   :  { %v229_v4 = vmul.f32 %v227_v3, %v209_v59 }
 0x698   :  { %v231_v5 = vrot.slane %v229_v4, 4 }
 0x69a   :  { %232 = vrot.lane.b32.xlu2 %v231_v5, %s650_s11 }
 0x6f4   :  { %v233_v6 = vpop.permute.xlu2 %232 }
 0x6f5   :  { %574 = vmatmul.msk.f32.vlgmr.msrb.gmra.mxu1 %vm71_vm4, %v233_v6 }
 0x772   :  { %v253_v7 = vpop.f32.mrf.mxu1 }
 0x773   :  { %v257_v8 = vrot.slane %v253_v7, 2 }
 0x775   :  { %v259_v10 = vadd.f32 %v257_v8, %v715_v12 }
 0x777   :  { %v260_v11 = vmul.f32 0.5, %v259_v10 }
 0x779   :  { %v261_v13 = vsel %vm718_vm3, %v259_v10, %v260_v11 }
 0x77a   :  { %598 = vtanh.f32 %v261_v13 }
 0x780   :  { %v599_v14 = vpop.eup %598 }
 0x781   :  { %v263_v16 = vmul.f32 0.5, %v599_v14 }
 0x783   :  { %v264_v17 = vadd.f32 0.5, %v263_v16 }
 0x785   :  { %v265_v18 = vsel %vm718_vm3, %v599_v14, %v264_v17 }
 0x786   :  { %271 = vrot.lane.b32.xlu0 %v265_v18, %s649_s3  ;;  %v269_v22 = vmul.f32 %v267_v21, %v265_v18 }
 0x7f8   :  { %v272_v19 = vpop.permute.xlu0 %271 }
 0x7f9   :  { %v274_v20 = vmul.f32 %v272_v19, %v265_v18 }
 0x7fb   :  { %276 = vrot.lane.b32.xlu1 %v274_v20, %s650_s11 }
 0x86d   :  { %v277_v12 = vpop.permute.xlu1 %276 }
 0x86e   :  { %v279_v23 = vadd.f32 %v277_v12, %v269_v22 }
 0x870   :  { %600 = vtanh.f32 %v279_v23  ;;  %v320_v9 = vrot.slane %v279_v23, 6 }
 0x876   :  { %v601_v24 = vpop.eup %600 }
 0x877   :  { %282 = vrot.lane.b32.xlu2 %v601_v24, %s649_s3 }
 0x8d1   :  { %v283_v25 = vpop.permute.xlu2 %282 }
 0x8d2   :  { %v285_v26 = vmul.f32 %v283_v25, %v265_v18 }
 0x8d4   :  { %v287_v27 = vrot.slane %v285_v26, 6 }
 0x8d6   :  { %288 = vrot.lane.b32.xlu0 %v287_v27, %s650_s11 }
 0x948   :  { %v289_v29 = vpop.permute.xlu0 %288 }
 0x949   :  { %575 = vmatmul.msk.f32.vlgmr.msrb.gmra.mxu2 %vm71_vm4, %v289_v29 }
 0x9cc   :  { %v309_v32 = vpop.f32.mrf.mxu2 }
 0x9cd   :  { %v312_v33 = vadd.f32 %v309_v32, %v766_v31 }
 0x9cf   :  { %v313_v34 = vmul.f32 0.5, %v312_v33 }
 0x9d1   :  { %v314_v35 = vsel %vm718_vm3, %v312_v33, %v313_v34 }
 0x9d2   :  { %602 = vtanh.f32 %v314_v35 }
 0x9d8   :  { %v603_v36 = vpop.eup %602 }
 0x9d9   :  { %v316_v37 = vmul.f32 0.5, %v603_v36 }
 0x9db   :  { %v317_v38 = vadd.f32 0.5, %v316_v37 }
 0x9dd   :  { %v318_v39 = vsel %vm718_vm3, %v603_v36, %v317_v38 }
 0x9de   :  { %324 = vrot.lane.b32.xlu1 %v318_v39, %s649_s3  ;;  %v322_v42 = vmul.f32 %v320_v9, %v318_v39 }
 0xa50   :  { %v325_v40 = vpop.permute.xlu1 %324 }
 0xa51   :  { %v327_v41 = vmul.f32 %v325_v40, %v318_v39 }
 0xa53   :  { %329 = vrot.lane.b32.xlu2 %v327_v41, %s650_s11 }
 0xaad   :  { %v330_v43 = vpop.permute.xlu2 %329 }
 0xaae   :  { %v332_v44 = vadd.f32 %v330_v43, %v322_v42  ;;  %v509_v42 = vld [vmem:[%s833_s4 + $0x18] sm:$0xff]  ;;  %v507_v43 = vld [vmem:[%s833_s4 + $0x8] sm:$0xff] }
 0xaaf   :  { %532 = vmatpush.msra.mxu2 %v509_v42 }
 0xab0   :  { %604 = vtanh.f32 %v332_v44  ;;  %v375_v60 = vrot.slane %v332_v44, 6  ;;  %v506_v44 = vld [vmem:[%s833_s4] sm:$0xff]  ;;  %s651_s4 = smov [#allocation2]  }
 0xab1   :  { %533 = vmatpush.msra.mxu2 %v508_v15  ;;  %s559_s23 = sshll.u32 %s651_s4, 4  ;;  %s560_s23 = int_to_ptr.vmem [resolvable:$true] %s559_s23 }
 0xab3   :  { %534 = vmatpush.msra.mxu2 %v507_v43 }
 0xab5   :  { %535 = vmatpush.msra.mxu2 %v506_v44 }
 0xab6   :  { %v605_v45 = vpop.eup %604 }
 0xab7   :  { %335 = vrot.lane.b32.xlu0 %v605_v45, %s649_s3 }
 0xb29   :  { %v336_v46 = vpop.permute.xlu0 %335 }
 0xb2a   :  { %v338_v47 = vmul.f32 %v336_v46, %v318_v39 }
 0xb2c   :  { %340 = vrot.lane.b32.xlu1 %v338_v47, %s650_s11 }
 0xb9e   :  { %v341_v48 = vpop.permute.xlu1 %340 }
 0xb9f   :  { %576 = vmatmul.msk.f32.vlgmr.msrb.gmra.mxu3 %vm71_vm4, %v341_v48 }
 0xc22   :  { %v361_v49 = vpop.f32.mrf.mxu3 }
 0xc23   :  { %v365_v50 = vrot.slane %v361_v49, 6  ;;  %v585_v49 = vld [vmem:[%s834_s5] ss:$0 sm:$0xff] }
 0xc25   :  { %v367_v51 = vadd.f32 %v365_v50, %v766_v31 }
 0xc27   :  { %v368_v52 = vmul.f32 0.5, %v367_v51 }
 0xc29   :  { %v369_v53 = vsel %vm718_vm3, %v367_v51, %v368_v52 }
 0xc2a   :  { %606 = vtanh.f32 %v369_v53 }
 0xc30   :  { %v607_v54 = vpop.eup %606 }
 0xc31   :  { %v371_v55 = vmul.f32 0.5, %v607_v54 }
 0xc33   :  { %v372_v56 = vadd.f32 0.5, %v371_v55 }
 0xc35   :  { %v373_v57 = vsel %vm718_vm3, %v607_v54, %v372_v56 }
 0xc36   :  { %379 = vrot.lane.b32.xlu2 %v373_v57, %s649_s3  ;;  %v377_v61 = vmul.f32 %v375_v60, %v373_v57 }
 0xc90   :  { %v380_v58 = vpop.permute.xlu2 %379 }
 0xc91   :  { %v382_v59 = vmul.f32 %v380_v58, %v373_v57 }
 0xc93   :  { %384 = vrot.lane.b32.xlu0 %v382_v59, %s650_s11 }
 0xd05   :  { %v385_v62 = vpop.permute.xlu0 %384 }
 0xd06   :  { %v387_v63 = vadd.f32 %v385_v62, %v377_v61 }
 0xd08   :  { %608 = vtanh.f32 %v387_v63  ;;  %v431_v19 = vrot.slane %v387_v63, 6 }
 0xd0e   :  { %v609_v0 = vpop.eup %608 }
 0xd0f   :  { %390 = vrot.lane.b32.xlu1 %v609_v0, %s649_s3 }
 0xd81   :  { %v391_v1 = vpop.permute.xlu1 %390 }
 0xd82   :  { %v393_v2 = vmul.f32 %v391_v1, %v373_v57 }
 0xd84   :  { %v395_v3 = vrot.slane %v393_v2, 2 }
 0xd86   :  { %396 = vrot.lane.b32.xlu2 %v395_v3, %s650_s11 }
 0xde0   :  { %v397_v4 = vpop.permute.xlu2 %396 }
 0xde1   :  { %577 = vmatmul.msk.f32.vlgmr.msrb.gmra.mxu0 %vm71_vm4, %v397_v4 }
 0xe5e   :  { %v417_v5 = vpop.f32.mrf.mxu0 }
 0xe5f   :  { %v421_v6 = vrot.slane %v417_v5, 4 }
 0xe61   :  { %v423_v7 = vadd.f32 %v421_v6, %v766_v31 }
 0xe63   :  { %v424_v8 = vmul.f32 0.5, %v423_v7 }
 0xe65   :  { %v425_v10 = vsel %vm718_vm3, %v423_v7, %v424_v8 }
 0xe66   :  { %610 = vtanh.f32 %v425_v10 }
 0xe6c   :  { %v611_v11 = vpop.eup %610 }
 0xe6d   :  { %v427_v13 = vmul.f32 0.5, %v611_v11 }
 0xe6f   :  { %v428_v14 = vadd.f32 0.5, %v427_v13 }
 0xe71   :  { %v429_v16 = vsel %vm718_vm3, %v611_v11, %v428_v14 }
 0xe72   :  { %435 = vrot.lane.b32.xlu0 %v429_v16, %s649_s3  ;;  %v433_v20 = vmul.f32 %v431_v19, %v429_v16 }
 0xee4   :  { %v436_v17 = vpop.permute.xlu0 %435 }
 0xee5   :  { %v438_v18 = vmul.f32 %v436_v17, %v429_v16 }
 0xee7   :  { %440 = vrot.lane.b32.xlu1 %v438_v18, %s650_s11 }
 0xf59   :  { %v441_v21 = vpop.permute.xlu1 %440 }
 0xf5a   :  { %v443_v22 = vadd.f32 %v441_v21, %v433_v20 }
 0xf5c   :  { %612 = vtanh.f32 %v443_v22  ;;  %v487_v39 = vrot.slane %v443_v22, 6 }
 0xf62   :  { %v613_v12 = vpop.eup %612 }
 0xf63   :  { %446 = vrot.lane.b32.xlu2 %v613_v12, %s649_s3 }
 0xfbd   :  { %v447_v23 = vpop.permute.xlu2 %446 }
 0xfbe   :  { %v449_v24 = vmul.f32 %v447_v23, %v429_v16 }
 0xfc0   :  { %v451_v25 = vrot.slane %v449_v24, 4 }
 0xfc2   :  { %452 = vrot.lane.b32.xlu0 %v451_v25, %s650_s11 }
0x1034   :  { %v453_v26 = vpop.permute.xlu0 %452 }
0x1035   :  { %578 = vmatmul.msk.f32.vlgmr.msra.gmra.mxu1 %vm71_vm4, %v453_v26 }
0x10b2   :  { %v473_v27 = vpop.f32.mrf.mxu1 }
0x10b3   :  { %v477_v28 = vrot.slane %v473_v27, 2 }
0x10b5   :  { %v479_v29 = vadd.f32 %v477_v28, %v766_v31 }
0x10b7   :  { %v480_v30 = vmul.f32 0.5, %v479_v29 }
0x10b9   :  { %v481_v32 = vsel %vm718_vm3, %v479_v29, %v480_v30 }
0x10ba   :  { %614 = vtanh.f32 %v481_v32 }
0x10c0   :  { %v615_v33 = vpop.eup %614 }
0x10c1   :  { %v483_v34 = vmul.f32 0.5, %v615_v33 }
0x10c3   :  { %v484_v35 = vadd.f32 0.5, %v483_v34 }
0x10c5   :  { %v485_v36 = vsel %vm718_vm3, %v615_v33, %v484_v35 }
0x10c6   :  { %491 = vrot.lane.b32.xlu1 %v485_v36, %s649_s3  ;;  %v489_v40 = vmul.f32 %v487_v39, %v485_v36 }
0x1138   :  { %v492_v37 = vpop.permute.xlu1 %491 }
0x1139   :  { %v494_v38 = vmul.f32 %v492_v37, %v485_v36 }
0x113b   :  { %496 = vrot.lane.b32.xlu2 %v494_v38, %s650_s11 }
0x1195   :  { %v497_v31 = vpop.permute.xlu2 %496 }
0x1196   :  { %v499_v41 = vadd.f32 %v497_v31, %v489_v40 }
0x1198   :  { %616 = vtanh.f32 %v499_v41 }
0x119e   :  { %v617_v9 = vpop.eup %616 }
0x119f   :  { %502 = vrot.lane.b32.xlu0 %v617_v9, %s649_s3 }
0x1211   :  { %v503_v45 = vpop.permute.xlu0 %502 }
0x1212   :  { %v505_v46 = vmul.f32 %v503_v45, %v485_v36 }
0x1214   :  { %v515_v47 = vrot.slane %v505_v46, 6 }
0x1216   :  { %516 = vrot.lane.b32.xlu1 %v515_v47, %s650_s11 }
0x1288   :  { %v517_v48 = vpop.permute.xlu1 %516 }
0x1289   :  { %579 = vmatmul.msk.f32.vlgmr.msra.gmra.mxu2 %vm71_vm4, %v517_v48 }
0x130c   :  { %v537_v50 = vpop.f32.mrf.mxu2 }
0x130d   :  { %v538_v51 = vadd.f32 %v585_v49, %v537_v50 }
0x130f   :  { %v541_v52 = vsel %vm540_vm5, %v538_v51, -inf }
0x1310   :  { %542 = vmax.xlane.f32.xlu2 %v541_v52 }
0x1383   :  { %v543_v53 = vpop.xlane.xlu2 %542 }
0x1384   :  { %v544_v54 = vsub.f32 %v538_v51, %v543_v53 }
0x1386   :  { %v545_v55 = vmul.f32 1.442695, %v544_v54 }
0x1388   :  { %618 = vpow2.f32 %v545_v55 }
0x138e   :  { %v619_v56 = vpop.eup %618 }
0x138f   :  { %v547_v57 = vsel %vm540_vm5, %v619_v56, 0.0 }
0x1390   :  { %548 = vadd.xlane.f32.xlu0 %v547_v57 }
0x1403   :  { %v549_v58 = vpop.xlane.xlu0 %548 }
0x1404   :  { %620 = vlog2.f32 %v549_v58 }
0x140a   :  { %v621_v59 = vpop.eup %620 }
0x140b   :  { %v551_v60 = vmul.f32 0.6931472, %v621_v59 }
0x140d   :  { %v552_v61 = vsub.f32 %v544_v54, %v551_v60 }
0x140f   :  { %553 = vst.msk [vmem:[#allocation2] sm:$0x3] %vm540_vm5, %v552_v61 }
0x1410   :  { %564 = dma.vmem_to_hbm [thread:$0]  %s560_s23, 32, %s562_s25, [#allocation3]  }
0x1411   :  { %646 = dma.done.wait [#allocation3], 32  }
0x1412   :  { %647 = vsyncadd [#allocation3], 4294967264 }
0x1413   :  { %569 = vsyncpa [#allocation3], 1 }

</bundles_post_ra>
